<compile_context>
chip_gen: v7x
topology: tpu7x:2x2x1
jax: 0.10.0
libtpu: 0.0.40
codegen_flags: <defaults>
</compile_context>

<pallas_src>
import math

import jax
import jax.numpy as jnp
from jax import lax
from jax.experimental import pallas as pl
from jax.experimental.pallas import tpu as pltpu


def make_pos_embedding(emb_size: int, maxlen: int = 5000,
                       dtype=jnp.float32) -> jnp.ndarray:
    """Deterministic buffer, identical to the PyTorch __init__ formula."""
    assert emb_size % 2 == 0, "PositionalEncoding requires an even emb_size"
    den = jnp.exp(-jnp.arange(0, emb_size, 2, dtype=jnp.float32)
                  * math.log(10000.0) / emb_size)                     # (E//2,)
    pos = jnp.arange(0, maxlen, dtype=jnp.float32).reshape(maxlen, 1)  # (maxlen, 1)
    angles = pos * den                                                 # (maxlen, E//2)
    pe = jnp.zeros((maxlen, emb_size), dtype=jnp.float32)
    pe = pe.at[:, 0::2].set(jnp.sin(angles))
    pe = pe.at[:, 1::2].set(jnp.cos(angles))
    return pe.astype(dtype)                                            # (maxlen, E)


def _pe_add_3d_kernel(tok_ref, pe_ref, out_ref):
    # tok_ref: (1, TS, E)   pe_ref: (TS, E)   out_ref: (1, TS, E)
    out_ref[...] = (tok_ref[...] + pe_ref[...][None, :, :]).astype(out_ref.dtype)


def _pe_add_2d_kernel(tok_ref, pe_ref, out_ref):
    # tok_ref: (BB, C)   pe_ref: (PR, C) with PR == 1 (broadcast) or PR | BB.
    t = tok_ref[...]
    p = pe_ref[...]
    if p.shape[0] not in (1, t.shape[0]):
        # Replicate the folded PE rows up to the block height (cheap sublane
        # copy in vregs, no extra HBM traffic).
        p = jnp.tile(p, (t.shape[0] // p.shape[0], 1))
    out_ref[...] = (t + p).astype(out_ref.dtype)


_TARGET_BLOCK_BYTES = 2 << 20  # ~2 MiB token/output blocks (2-4 MiB sweet spot)
_VMEM_LIMIT_BYTES = 32 * 1024 * 1024


def positional_encoding(token_embedding: jnp.ndarray,
                        pos_table: jnp.ndarray,
                        pos_ind: int = 0) -> jnp.ndarray:
    """token_embedding: (B, S, E); pos_table: (maxlen, E); returns (B, S, E)."""
    # TODO(synk): the PyTorch ndim<2 branch (single-token (E,) input) is not
    # handled; callers should pass the standard batch-first (B, S, E) tensor.
    B, S, E = token_embedding.shape
    maxlen, E2 = pos_table.shape
    assert E == E2
    if isinstance(pos_ind, int):
        assert 0 <= pos_ind and pos_ind + S <= maxlen, "pos_ind + S exceeds maxlen"

    dtype = token_embedding.dtype
    itemsize = jnp.dtype(dtype).itemsize
    sublane_align = {4: 8, 2: 16, 1: 32}.get(itemsize, 8)

    # Slice ONLY the needed S rows of the table (no (maxlen, E) DMA) and match
    # the token dtype so kernel HBM traffic is minimal.
    # TODO(synk): for small B*S*E this slice+cast is a separate un-hidden XLA
    # pass; it could be folded into the kernel via scalar-prefetched pos_ind.
    start = jnp.clip(jnp.asarray(pos_ind, jnp.int32), 0, maxlen - S)
    pe = lax.dynamic_slice(pos_table, (start, jnp.int32(0)), (S, E)).astype(dtype)

    compiler_params = pltpu.CompilerParams(
        dimension_semantics=("parallel", "parallel"),
        vmem_limit_bytes=_VMEM_LIMIT_BYTES,
    )

    if E % 128 == 0:
        # Natural (1, TS, E) blocking is already lane-dense.
        ts_target = max(
            sublane_align,
            (_TARGET_BLOCK_BYTES // (E * itemsize)) // sublane_align * sublane_align,
        )
        ts = S if S <= ts_target else ts_target
        # Batch is the INNERMOST grid axis: the PE block index (s, 0) is
        # constant across consecutive steps, so its DMA is elided (PE read
        # once total instead of once per batch).
        grid_spec = pltpu.PrefetchScalarGridSpec(
            num_scalar_prefetch=0,
            grid=(pl.cdiv(S, ts), B),
            in_specs=[
                pl.BlockSpec((1, ts, E), lambda s, b: (b, s, 0)),   # token block
                pl.BlockSpec((ts, E), lambda s, b: (s, 0)),         # PE rows (reused)
            ],
            out_specs=pl.BlockSpec((1, ts, E), lambda s, b: (b, s, 0)),
        )
        return pl.pallas_call(
            _pe_add_3d_kernel,
            out_shape=jax.ShapeDtypeStruct((B, S, E), dtype),
            grid_spec=grid_spec,
            compiler_params=compiler_params,
        )(token_embedding, pe)

    # E not a 128-multiple: flatten (B, S, E) -> (B, S*E) so stores are
    # full-lane (>=128-wide) instead of masked vst.msk.
    SE = S * E

    if B % 8 == 0:
        rows, cols, bb = B, SE, 8
        tok2 = token_embedding.reshape(rows, cols)
        pe2 = pe.reshape(1, cols)                      # broadcast over batch rows
    else:
        # Fold batch with a chunk of the flattened axis so blocks use all 8
        # sublanes: (B, S*E) -> (B*r, S*E/r) with B*r % 8 == 0.
        r = 8 // math.gcd(B, 8)
        if SE % (128 * r) == 0:
            rows, cols, bb = B * r, SE // r, 8
            tok2 = token_embedding.reshape(rows, cols)
            pe2 = pe.reshape(r, cols)                  # row j needs PE row j % r
        else:
            # Fallback: correct but sublane-padded blocks (small shapes only).
            rows, cols, bb = B, SE, B
            tok2 = token_embedding.reshape(rows, cols)
            pe2 = pe.reshape(1, cols)

    c_target = max(128, ((_TARGET_BLOCK_BYTES // itemsize) // bb) // 128 * 128)
    c = cols if cols <= c_target else c_target

    pr = pe2.shape[0]
    # Batch-like axis innermost again -> PE chunk DMA elided across it.
    grid_spec = pltpu.PrefetchScalarGridSpec(
        num_scalar_prefetch=0,
        grid=(pl.cdiv(cols, c), rows // bb),
        in_specs=[
            pl.BlockSpec((bb, c), lambda ci, bi: (bi, ci)),   # token chunk
            pl.BlockSpec((pr, c), lambda ci, bi: (0, ci)),    # PE chunk (reused)
        ],
        out_specs=pl.BlockSpec((bb, c), lambda ci, bi: (bi, ci)),
    )
    out2 = pl.pallas_call(
        _pe_add_2d_kernel,
        out_shape=jax.ShapeDtypeStruct((rows, cols), dtype),
        grid_spec=grid_spec,
        compiler_params=compiler_params,
    )(tok2, pe2)
    return out2.reshape(B, S, E)


if __name__ == "__main__":
    key = jax.random.PRNGKey(0)
    k1, k2, k3, k4 = jax.random.split(key, 4)

    # Case 1: E < 128, fold not possible (SE % (128*r) != 0) -> fallback path.
    B, S, E = 2, 8, 32
    maxlen, pos_ind = 64, 3
    tok = jax.random.normal(k1, (B, S, E), dtype=jnp.float32)
    table = make_pos_embedding(E, maxlen)
    out = jax.block_until_ready(positional_encoding(tok, table, pos_ind=pos_ind))
    ref = tok + table[pos_ind:pos_ind + S, :][None, :, :]
    assert out.shape == (B, S, E)
    assert jnp.allclose(out, ref, atol=1e-6, rtol=1e-6), "mismatch (fallback 2D path)"

    # Case 2: E < 128 with sublane folding (B=2 -> r=4, rows=8, cols=128).
    B2, S2, E2 = 2, 8, 64
    maxlen2, pos_ind2 = 64, 1
    tok2 = jax.random.normal(k2, (B2, S2, E2), dtype=jnp.float32)
    table2 = make_pos_embedding(E2, maxlen2)
    out2 = jax.block_until_ready(positional_encoding(tok2, table2, pos_ind=pos_ind2))
    ref2 = tok2 + table2[pos_ind2:pos_ind2 + S2, :][None, :, :]
    assert out2.shape == (B2, S2, E2)
    assert jnp.allclose(out2, ref2, atol=1e-6, rtol=1e-6), "mismatch (folded 2D path)"

    # Case 3: E a multiple of 128 -> native (B, S, E) path, batch-inner grid.
    B3, S3, E3 = 2, 16, 128
    maxlen3, pos_ind3 = 64, 5
    tok3 = jax.random.normal(k3, (B3, S3, E3), dtype=jnp.float32)
    table3 = make_pos_embedding(E3, maxlen3)
    out3 = jax.block_until_ready(positional_encoding(tok3, table3, pos_ind=pos_ind3))
    ref3 = tok3 + table3[pos_ind3:pos_ind3 + S3, :][None, :, :]
    assert out3.shape == (B3, S3, E3)
    assert jnp.allclose(out3, ref3, atol=1e-6, rtol=1e-6), "mismatch (3D path)"

    # Case 4: bf16 storage dtype on the 3D path (native bf16 add on v6e/v7x).
    B4, S4, E4 = 2, 16, 256
    maxlen4, pos_ind4 = 64, 2
    tok4 = jax.random.normal(k4, (B4, S4, E4), dtype=jnp.float32).astype(jnp.bfloat16)
    table4 = make_pos_embedding(E4, maxlen4)
    out4 = jax.block_until_ready(positional_encoding(tok4, table4, pos_ind=pos_ind4))
    ref4 = tok4.astype(jnp.float32) + table4[pos_ind4:pos_ind4 + S4, :][None, :, :]
    assert out4.shape == (B4, S4, E4)
    assert jnp.allclose(out4.astype(jnp.float32), ref4, atol=5e-2, rtol=5e-2), \
        "mismatch (bf16 3D path)"

    print("KERNEL_OK")
</pallas_src>

<mosaic_0001>
module attributes {stable_mosaic.version = 11 : i64} {
  func.func @_pe_add_2d_kernel(%arg0: i32, %arg1: i32, %arg2: memref<2x256xf32, #tpu.memory_space<vmem>>, %arg3: memref<1x256xf32, #tpu.memory_space<vmem>>, %arg4: memref<2x256xf32, #tpu.memory_space<vmem>>) attributes {dimension_semantics = [#tpu.dimension_semantics<parallel>, #tpu.dimension_semantics<parallel>], iteration_bounds = array<i64: 1, 1>, scalar_prefetch = 0 : i64, scratch_operands = 0 : i64, tpu.core_type = #tpu.core_type<tc>, window_params = [{transform_indices = @transform_0, window_bounds = array<i64: 2, 256>}, {transform_indices = @transform_1, window_bounds = array<i64: 1, 256>}, {transform_indices = @transform_2, window_bounds = array<i64: 2, 256>}]} {
    %c0 = arith.constant 0 : index
    %c0_0 = arith.constant 0 : index
    %0 = vector.load %arg2[%c0, %c0_0] : memref<2x256xf32, #tpu.memory_space<vmem>>, vector<2x256xf32>
    %c0_1 = arith.constant 0 : index
    %c0_2 = arith.constant 0 : index
    %1 = vector.load %arg3[%c0_1, %c0_2] : memref<1x256xf32, #tpu.memory_space<vmem>>, vector<1x256xf32>
    %2 = vector.broadcast %1 : vector<1x256xf32> to vector<2x256xf32>
    %3 = arith.addf %0, %2 : vector<2x256xf32>
    %c0_3 = arith.constant 0 : index
    %c0_4 = arith.constant 0 : index
    %4 = vector.load %arg4[%c0_3, %c0_4] : memref<2x256xf32, #tpu.memory_space<vmem>>, vector<2x256xf32>
    tpu.vector_store %arg4[%c0_3, %c0_4], %3 {strides = array<i32>} : memref<2x256xf32, #tpu.memory_space<vmem>>, vector<2x256xf32>,
    return
  }
  func.func @transform_0(%arg0: i32, %arg1: i32) -> (i32, i32) {
    %c0_i32 = arith.constant 0 : i32
    return %arg1, %arg0 : i32, i32
  }
  func.func @transform_1(%arg0: i32, %arg1: i32) -> (i32, i32) {
    %c0_i32 = arith.constant 0 : i32
    %c0_i32_0 = arith.constant 0 : i32
    return %c0_i32, %arg0 : i32, i32
  }
  func.func @transform_2(%arg0: i32, %arg1: i32) -> (i32, i32) {
    %c0_i32 = arith.constant 0 : i32
    return %arg1, %arg0 : i32, i32
  }
}

</mosaic_0001>

<bundles_post_ra>
// kernel: tpu_custom_call.1
= control target key start
LH: loop header
LB: loop body
LE: loop exit
PB: predicated region body
PF: predicated region fallthrough
CT: control target
= control target key end

     0   :  { %7 = vsyncpa [#allocation3], 0  ;;  %s157_s0 = inlined_call_operand.hbm [shape: f32[2,256], index: 0, kind: input, shape index: {}]   ;;  %s158_s1 = inlined_call_operand.vmem [shape: f32[1,256], index: 1, kind: input, shape index: {}]   ;;  %s159_s2 = inlined_call_operand.hbm [shape: f32[2,256], index: 2, kind: output, shape index: {}]  }
   0x1   :  { %8 = vsyncpa [#allocation4], 0  ;;  %s112_s9 = smov [#allocation2]   ;;  %s64_s13 = scalar_lea.hbm %s157_s0, 64 }
   0x2   :  { %s15_s10 = sshll.u32 %s112_s9, 4  ;;  %p65_p0 = scmp.ne.s32.totalorder %s157_s0, %s64_s13  ;;  %s16_s10 = int_to_ptr.vmem [resolvable:$true] %s15_s10 }
   0x3   :  { %p68_p1 = scmp.lt.u32.totalorder %s64_s13, %s157_s0 }
   0x5   :  { %p70_p2 = pnand %p68_p1, %p65_p0 }
   0x7   :  { %73 = shalt.err (!%p70_p2)
}
   0x8   :  { %s74_s18 = scalar_lea.vmem %s16_s10, 64  ;;  %p79_p4 = scmp.lt.s32.totalorder %s16_s10, %s16_s10 }
   0x9   :  { %p75_p3 = scmp.ne.s32.totalorder %s16_s10, %s74_s18  ;;  %p80_p5 = scmp.lt.s32.totalorder %s74_s18, %s74_s18 }
   0xb   :  { %p81_p6 = por %p80_p5, %p79_p4 }
   0xd   :  { %p82_p7 = pnand %p81_p6, %p75_p3 }
   0xf   :  { %85 = shalt.err (!%p82_p7)
}
  0x10   :  { %18 = dma.hbm_to_vmem [thread:$0]  %s157_s0, 64, %s16_s10, [#allocation3]  }
  0x11   :  { %108 = dma.done.wait [#allocation3], 64  }
  0x12   :  { %109 = vsyncadd [#allocation3], 4294967232  ;;  %v27_v0 = vlaneseq  ;;  %v113_v1 = vmov 1983009808   ;;  %v25_v7 = vld [vmem:[%s158_s1] sm:$0x3] }
  0x13   :  { %v37_v2 = vunpack.c.l.s4 %v113_v1  ;;  %v24_v12 = vld [vmem:[#allocation2] sm:$0xf]  ;;  %s114_s23 = smov [#allocation5]  }
  0x14   :  { %v28_v3 = vshrl.u32 %v27_v0, 7  ;;  %s52_s0 = sshll.u32 %s114_s23, 4  ;;  %s53_s0 = int_to_ptr.vmem [resolvable:$true] %s52_s0 }
  0x15   :  { %v38_v6 = vunpack.c.0.s8 %v37_v2  ;;  %s86_s24 = scalar_lea.vmem %s53_s0, 64  ;;  %p91_p9 = scmp.lt.s32.totalorder %s53_s0, %s53_s0 }
  0x16   :  { %v29_v4 = vsub.s32 0, %v28_v3  ;;  %v33_v5 = vsub.s32 1, %v28_v3  ;;  %p87_p8 = scmp.ne.s32.totalorder %s53_s0, %s86_s24  ;;  %p92_p10 = scmp.lt.s32.totalorder %s86_s24, %s86_s24 }
  0x17   :  { %v41_v10 = vsub.s32 %v38_v6, %v28_v3 }
  0x18   :  { %v30_v8 = vrot.slane %v25_v7, %v29_v4  ;;  %v34_v9 = vrot.slane %v25_v7, %v33_v5  ;;  %p93_p11 = por %p92_p10, %p91_p9 }
  0x1a   :  { %v35_v11 = vcombine.low %v30_v8, %v34_v9  ;;  %p94_p12 = pnand %p93_p11, %p87_p8 }
  0x1c   :  { %v42_v13 = vrot.slane %v35_v11, %v41_v10 }
  0x1e   :  { %v44_v14 = vadd.f32 %v42_v13, %v24_v12 }
  0x20   :  { %45 = vst [vmem:[#allocation5] sm:$0xf] %v44_v14 }
  0x21   :  { %97 = shalt.err (!%p94_p12)
}
  0x22   :  { %s98_s26 = scalar_lea.hbm %s159_s2, 64 }
  0x23   :  { %p99_p13 = scmp.ne.s32.totalorder %s159_s2, %s98_s26  ;;  %p102_p0 = scmp.lt.u32.totalorder %s98_s26, %s159_s2 }
  0x25   :  { %p104_p1 = pnand %p102_p0, %p99_p13 }
  0x27   :  { %107 = shalt.err (!%p104_p1)
}
  0x28   :  { %55 = dma.vmem_to_hbm [thread:$0]  %s53_s0, 64, %s159_s2, [#allocation4]  }
  0x29   :  { %110 = dma.done.wait [#allocation4], 64  }
  0x2a   :  { %111 = vsyncadd [#allocation4], 4294967232 }
  0x2b   :  { %59 = vsyncpa [#allocation3], 1 }
  0x2c   :  { %60 = vsyncpa [#allocation4], 1 }

</bundles_post_ra>
